<compile_context>
chip_gen: v7x
topology: tpu7x:2x2x1
jax: 0.10.0
libtpu: 0.0.40
codegen_flags: <defaults>
</compile_context>

<pallas_src>
import functools

import jax
import jax.numpy as jnp
from jax.experimental import pallas as pl
from jax.experimental.pallas import tpu as pltpu


def _patcher_kernel(x_ref, o_ref, *, L, patch_dim, stride, N):
    """One grid step: all N patches for a tile of BM rows.

    x_ref: (bm_tile, L)      input rows (time on lanes)
    o_ref: (bm_tile, N * P)  all patches for these rows, back-to-back
    """
    x = x_ref[...]                           # (bm_tile, L)
    rows = x.shape[0]
    last_start = (N - 1) * stride
    valid = L - last_start                   # un-padded lanes of the last patch
    pad = patch_dim - valid                  # replicate-pad lanes (1..stride)
    last_col = x[:, L - 1:L]                 # (bm_tile, 1) last time step

    def piece(n):
        if n < N - 1:
            # Only the last patch touches the padding; these slice x directly.
            return x[:, n * stride: n * stride + patch_dim]
        tail = x[:, last_start:L]            # (bm_tile, valid)
        if pad <= 0:
            return tail
        return jnp.concatenate(
            [tail, jnp.broadcast_to(last_col, (rows, pad))], axis=1)

    # TODO(synk): for patch_dim % stride == 0 the slice+concat below could be
    # replaced by two stride-shifted slabs + pltpu.roll/select interleave to
    # further cut XLU traffic (perf item 3); kept generic slicing for clarity.
    patches_per_chunk = max(1, 128 // patch_dim)
    n0 = 0
    while n0 < N:
        n1 = min(n0 + patches_per_chunk, N)
        pieces = [piece(n) for n in range(n0, n1)]
        chunk = pieces[0] if len(pieces) == 1 else jnp.concatenate(pieces, axis=1)
        # Full-width (128-lane aligned, except a possible final partial chunk)
        # store; static slice offsets.
        o_ref[:, n0 * patch_dim: n1 * patch_dim] = chunk
        n0 = n1


def _sublane_multiple(dtype):
    size = jnp.dtype(dtype).itemsize
    if size >= 4:
        return 8
    if size == 2:
        return 16
    return 32


def _choose_bm_tile(BM, L, NP, itemsize, sublane, min_steps=2):
    """Row tile: budget dbl-buffered blocks + in-kernel temps, >=2 grid steps."""
    budget = 6 * 1024 * 1024
    # Double-buffered in+out blocks plus in-kernel temporaries
    # (x register copy, one 128-lane chunk + live pieces).
    per_row = (2 * (L + NP) + L + 2 * 128) * itemsize
    t = budget // max(per_row, 1)
    # Cap so the grid has at least `min_steps` steps when legally possible
    # (v7x megacore sharding via "parallel"; pipelining on all gens).
    cap = pl.cdiv(pl.cdiv(BM, min_steps), sublane) * sublane
    if cap < BM:
        t = min(t, cap)
    t = (t // sublane) * sublane
    if t >= BM:
        return BM                            # full dim -> always legal
    return max(sublane, t)


def patcher_forward(x, patch_dim: int = 16, stride: int = 8):
    """x: (B, M, L) float array. Returns patches of shape (B, M, N, P)."""
    B, M, L = x.shape
    assert L >= patch_dim, "sequence length must be >= patch_dim"
    N = (L - patch_dim) // stride + 2
    BM = B * M
    NP = N * patch_dim

    x_bm = x.reshape(BM, L)                  # free reshape: fold batch & channel

    itemsize = jnp.dtype(x.dtype).itemsize
    sublane = _sublane_multiple(x.dtype)
    bm_tile = _choose_bm_tile(BM, L, NP, itemsize, sublane)
    grid = (pl.cdiv(BM, bm_tile),)

    kernel = functools.partial(
        _patcher_kernel, L=L, patch_dim=patch_dim, stride=stride, N=N)

    out_bm = pl.pallas_call(
        kernel,
        out_shape=jax.ShapeDtypeStruct((BM, NP), x.dtype),
        grid=grid,
        in_specs=[pl.BlockSpec((bm_tile, L), lambda i: (i, 0))],
        out_specs=pl.BlockSpec((bm_tile, NP), lambda i: (i, 0)),
        compiler_params=pltpu.CompilerParams(
            dimension_semantics=("parallel",),   # no cross-step deps
            vmem_limit_bytes=32 * 1024 * 1024,   # v7x-safe scoped budget
        ),
    )(x_bm)

    # Free metadata reshape: (BM, N*P) -> (B, M, N, P). No transpose needed.
    return out_bm.reshape(B, M, N, patch_dim)


def _reference_patcher(x, patch_dim: int = 16, stride: int = 8):
    """Pure-JAX reference mirroring the PyTorch forward."""
    B, M, L = x.shape
    N = (L - patch_dim) // stride + 2
    last_col = x[:, :, -1:]
    padding = jnp.repeat(last_col, stride, axis=2)
    xp = jnp.concatenate([x, padding], axis=2)
    patches = jnp.stack(
        [xp[:, :, n * stride: n * stride + patch_dim] for n in range(N)], axis=2)
    return patches  # (B, M, N, P)


if __name__ == "__main__":
    # Case 1: module defaults, evenly divisible sequence.
    x1 = jax.random.normal(jax.random.PRNGKey(0), (2, 4, 32), dtype=jnp.float32)
    out1 = jax.block_until_ready(patcher_forward(x1))
    ref1 = _reference_patcher(x1)
    assert out1.shape == ref1.shape, (out1.shape, ref1.shape)
    assert jnp.array_equal(out1, ref1), "Pallas patcher mismatch (L=32)"

    # Case 2: non-divisible remainder -> partial replicate padding in last patch.
    x2 = jax.random.normal(jax.random.PRNGKey(1), (2, 3, 37), dtype=jnp.float32)
    out2 = jax.block_until_ready(patcher_forward(x2))
    ref2 = _reference_patcher(x2)
    assert out2.shape == ref2.shape, (out2.shape, ref2.shape)
    assert jnp.array_equal(out2, ref2), "Pallas patcher mismatch (L=37)"

    # Case 3: multiple 128-lane output chunks and >= 2 grid steps.
    x3 = jax.random.normal(jax.random.PRNGKey(2), (4, 8, 256), dtype=jnp.float32)
    out3 = jax.block_until_ready(patcher_forward(x3))
    ref3 = _reference_patcher(x3)
    assert out3.shape == ref3.shape, (out3.shape, ref3.shape)
    assert jnp.array_equal(out3, ref3), "Pallas patcher mismatch (L=256)"

    # Case 4: bf16 input -> exercises dtype-aware sublane rounding (pure copy).
    x4 = jax.random.normal(jax.random.PRNGKey(3), (2, 8, 64), dtype=jnp.bfloat16)
    out4 = jax.block_until_ready(patcher_forward(x4))
    ref4 = _reference_patcher(x4)
    assert out4.shape == ref4.shape, (out4.shape, ref4.shape)
    assert jnp.array_equal(out4, ref4), "Pallas patcher mismatch (bf16)"

    print("KERNEL_OK")
</pallas_src>

<mosaic_0001>
module attributes {stable_mosaic.version = 11 : i64} {
  func.func @_patcher_kernel(%arg0: i32, %arg1: memref<8x32xf32, #tpu.memory_space<vmem>>, %arg2: memref<8x64xf32, #tpu.memory_space<vmem>>) attributes {dimension_semantics = [#tpu.dimension_semantics<parallel>], iteration_bounds = array<i64: 1>, scalar_prefetch = 0 : i64, scratch_operands = 0 : i64, tpu.core_type = #tpu.core_type<tc>, window_params = [{transform_indices = @transform_0, window_bounds = array<i64: 8, 32>}, {transform_indices = @transform_1, window_bounds = array<i64: 8, 64>}]} {
    %c0 = arith.constant 0 : index
    %c0_0 = arith.constant 0 : index
    %0 = vector.load %arg1[%c0, %c0_0] : memref<8x32xf32, #tpu.memory_space<vmem>>, vector<8x32xf32>
    %1 = vector.extract_strided_slice %0 {offsets = [0, 31], sizes = [8, 1], strides = [1, 1]} : vector<8x32xf32> to vector<8x1xf32>
    %2 = vector.extract_strided_slice %0 {offsets = [0, 0], sizes = [8, 16], strides = [1, 1]} : vector<8x32xf32> to vector<8x16xf32>
    %3 = vector.extract_strided_slice %0 {offsets = [0, 8], sizes = [8, 16], strides = [1, 1]} : vector<8x32xf32> to vector<8x16xf32>
    %4 = vector.extract_strided_slice %0 {offsets = [0, 16], sizes = [8, 16], strides = [1, 1]} : vector<8x32xf32> to vector<8x16xf32>
    %5 = vector.extract_strided_slice %0 {offsets = [0, 24], sizes = [8, 8], strides = [1, 1]} : vector<8x32xf32> to vector<8x8xf32>
    %6 = vector.shape_cast %1 : vector<8x1xf32> to vector<8x1xf32>
    %7 = vector.broadcast %6 : vector<8x1xf32> to vector<8x8xf32>
    %8 = tpu.concatenate %5, %7 in 1 : vector<8x8xf32>, vector<8x8xf32> -> vector<8x16xf32>
    %9 = tpu.concatenate %2, %3, %4, %8 in 1 : vector<8x16xf32>, vector<8x16xf32>, vector<8x16xf32>, vector<8x16xf32> -> vector<8x64xf32>
    %c0_1 = arith.constant 0 : index
    %c0_2 = arith.constant 0 : index
    %10 = vector.load %arg2[%c0_1, %c0_2] : memref<8x64xf32, #tpu.memory_space<vmem>>, vector<8x64xf32>
    tpu.vector_store %arg2[%c0_1, %c0_2], %9 {strides = array<i32>} : memref<8x64xf32, #tpu.memory_space<vmem>>, vector<8x64xf32>,
    return
  }
  func.func @transform_0(%arg0: i32) -> (i32, i32) {
    %c0_i32 = arith.constant 0 : i32
    %c0_i32_0 = arith.constant 0 : i32
    return %arg0, %c0_i32 : i32, i32
  }
  func.func @transform_1(%arg0: i32) -> (i32, i32) {
    %c0_i32 = arith.constant 0 : i32
    %c0_i32_0 = arith.constant 0 : i32
    return %arg0, %c0_i32 : i32, i32
  }
}

</mosaic_0001>

<bundles_post_ra>
// kernel: tpu_custom_call.1
= control target key start
LH: loop header
LB: loop body
LE: loop exit
PB: predicated region body
PF: predicated region fallthrough
CT: control target
= control target key end

     0   :  { %6 = vsyncpa [#allocation3], 0  ;;  %s162_s0 = inlined_call_operand.hbm [shape: f32[8,32], index: 0, kind: input, shape index: {}]   ;;  %s163_s1 = inlined_call_operand.hbm [shape: f32[8,64], index: 1, kind: output, shape index: {}]  }
   0x1   :  { %7 = vsyncpa [#allocation4], 0  ;;  %s121_s6 = smov [#allocation2]   ;;  %s73_s10 = scalar_lea.hbm %s162_s0, 128 }
   0x2   :  { %s14_s7 = sshll.u32 %s121_s6, 4  ;;  %p74_p0 = scmp.ne.s32.totalorder %s162_s0, %s73_s10  ;;  %s15_s7 = int_to_ptr.vmem [resolvable:$true] %s14_s7 }
   0x3   :  { %p77_p1 = scmp.lt.u32.totalorder %s73_s10, %s162_s0 }
   0x5   :  { %p79_p2 = pnand %p77_p1, %p74_p0 }
   0x7   :  { %82 = shalt.err (!%p79_p2)
}
   0x8   :  { %s83_s15 = scalar_lea.vmem %s15_s7, 128  ;;  %p88_p4 = scmp.lt.s32.totalorder %s15_s7, %s15_s7 }
   0x9   :  { %p84_p3 = scmp.ne.s32.totalorder %s15_s7, %s83_s15  ;;  %p89_p5 = scmp.lt.s32.totalorder %s83_s15, %s83_s15 }
   0xb   :  { %p90_p6 = por %p89_p5, %p88_p4 }
   0xd   :  { %p91_p7 = pnand %p90_p6, %p84_p3 }
   0xf   :  { %94 = shalt.err (!%p91_p7)
}
  0x10   :  { %17 = dma.hbm_to_vmem [thread:$0]  %s162_s0, 128, %s15_s7, [#allocation3]  }
  0x11   :  { %117 = dma.done.wait [#allocation3], 128  }
  0x12   :  { %118 = vsyncadd [#allocation3], 4294967168  ;;  %v122_v0 = vmov 31   ;;  %v21_v1 = vld [vmem:[#allocation2] sm:$0xff]  ;;  %s123_s18 = smov 8   ;;  %s124_s19 = smov 104  }
  0x13   :  { %72 = vset.pattern.permute.xlu0 %v122_v0  ;;  %32 = vrot.lane.b32.xlu1 %v21_v1, %s123_s18  ;;  %s125_s20 = smov 16   ;;  %vm30_vm0 = vcmask 64512   ;;  %s126_s21 = smov 48   ;;  %vm42_vm1 = vcmask 130048   ;;  %vm44_vm2 = vcmask 261120   ;;  %vm46_vm3 = vcmask 392192  }
  0x14   :  { %24 = vperm.xlu0 %72, %v21_v1   ;;  %s127_s0 = smov [#allocation5]   ;;  %vm48_vm4 = vcmask 523264  }
  0x15   :  { %s56_s22 = sshll.u32 %s127_s0, 4  ;;  %s57_s22 = int_to_ptr.vmem [resolvable:$true] %s56_s22 }
  0x16   :  { %s95_s23 = scalar_lea.vmem %s57_s22, 128  ;;  %p100_p9 = scmp.lt.s32.totalorder %s57_s22, %s57_s22 }
  0x17   :  { %35 = vrot.lane.b32.xlu1 %v21_v1, %s125_s20  ;;  %p96_p8 = scmp.ne.s32.totalorder %s57_s22, %s95_s23  ;;  %p101_p10 = scmp.lt.s32.totalorder %s95_s23, %s95_s23 }
  0x18   :  { %27 = vrot.lane.b32.xlu0 %v21_v1, %s124_s19 }
  0x19   :  { %p102_p11 = por %p101_p10, %p100_p9 }
  0x1b   :  { %p103_p12 = pnand %p102_p11, %p96_p8 }
  0x85   :  { %v33_v5 = vpop.permute.xlu1 %32 }
  0x86   :  { %v43_v6 = vsel %vm42_vm1, %v21_v1, %v33_v5 }
  0x89   :  { %v36_v7 = vpop.permute.xlu1 %35 }
  0x8a   :  { %v45_v8 = vsel %vm44_vm2, %v43_v6, %v36_v7 }
  0x93   :  { %v25_v2 = vpop.permute.xlu0 %24 }
  0x97   :  { %v28_v3 = vpop.permute.xlu0 %27 }
  0x98   :  { %v31_v4 = vsel %vm30_vm0, %v28_v3, %v25_v2 }
  0x99   :  { %39 = vrot.lane.b32.xlu0 %v31_v4, %s126_s21 }
 0x10b   :  { %v40_v9 = vpop.permute.xlu0 %39 }
 0x10c   :  { %v47_v10 = vsel %vm46_vm3, %v45_v8, %v40_v9 }
 0x10d   :  { %49 = vst.msk [vmem:[#allocation5] sm:$0xff] %vm48_vm4, %v47_v10 }
 0x10e   :  { %106 = shalt.err (!%p103_p12)
}
 0x10f   :  { %s107_s26 = scalar_lea.hbm %s163_s1, 128 }
 0x110   :  { %p108_p13 = scmp.ne.s32.totalorder %s163_s1, %s107_s26  ;;  %p111_p0 = scmp.lt.u32.totalorder %s107_s26, %s163_s1 }
 0x112   :  { %p113_p1 = pnand %p111_p0, %p108_p13 }
 0x114   :  { %116 = shalt.err (!%p113_p1)
}
 0x115   :  { %59 = dma.vmem_to_hbm [thread:$0]  %s57_s22, 128, %s163_s1, [#allocation4]  }
 0x116   :  { %119 = dma.done.wait [#allocation4], 128  }
 0x117   :  { %120 = vsyncadd [#allocation4], 4294967168 }
 0x118   :  { %63 = vsyncpa [#allocation3], 1 }
 0x119   :  { %64 = vsyncpa [#allocation4], 1 }

</bundles_post_ra>
